<compile_context>
chip_gen: v7x
topology: tpu7x:2x2x1
jax: 0.10.0
libtpu: 0.0.40
codegen_flags: <defaults>
</compile_context>

<pallas_src>
import functools
import math

import jax
import jax.numpy as jnp
from jax.experimental import pallas as pl
from jax.experimental.pallas import tpu as pltpu


def gru_cell_kernel(x_ref, h_ref, w_all_ref, u_rz_ref, u_h_ref, b_ref, out_ref,
                    *, hidden_size):
    H = hidden_size
    x = x_ref[...]            # (BT, I)  -- fed to MXU in its native dtype
    h = h_ref[...]            # (BT, H)

    # One wide input-side matmul: (BT, I) @ (I, 3H) -> [r | z | n] pre-acts,
    # with the per-gate (W_b + U_b) bias already folded in.
    xw = jnp.dot(x, w_all_ref[...], preferred_element_type=jnp.float32) + b_ref[...]
    # One wide hidden-side matmul for the r/z gates: (BT, H) @ (H, 2H).
    hu = jnp.dot(h, u_rz_ref[...], preferred_element_type=jnp.float32)

    h_f32 = h.astype(jnp.float32)
    r = jax.nn.sigmoid(xw[:, :H] + hu[:, :H])
    z = jax.nn.sigmoid(xw[:, H:2 * H] + hu[:, H:2 * H])

    # Candidate: r multiplies h BEFORE the Uh matmul (module semantics).
    rh = (r * h_f32).astype(h.dtype)
    n = jnp.tanh(xw[:, 2 * H:]
                 + jnp.dot(rh, u_h_ref[...], preferred_element_type=jnp.float32))

    out_ref[...] = (h_f32 + z * (n - h_f32)).astype(out_ref.dtype)


def fuse_params(params, input_size, hidden_size):
    """One-time weight prep: transpose to (in, out), concat gates, fold biases.

    Call this ONCE (e.g. at model init) and reuse the result every step —
    do not re-run it inside a recurrence loop.
    """
    H = hidden_size
    # PyTorch nn.Linear stores weight as (out, in); transpose so kernel does x @ W.
    w_all = jnp.concatenate(
        [params["Wr_w"].T, params["Wz_w"].T, params["Wh_w"].T], axis=1)     # (I, 3H)
    u_rz = jnp.concatenate(
        [params["Ur_w"].T, params["Uz_w"].T], axis=1)                        # (H, 2H)
    u_h = jnp.asarray(params["Uh_w"].T)                                      # (H, H)
    b_all = jnp.concatenate(
        [params["Wr_b"] + params["Ur_b"],
         params["Wz_b"] + params["Uz_b"],
         params["Wh_b"] + params["Uh_b"]]).reshape(1, 3 * H).astype(jnp.float32)
    return w_all, u_rz, u_h, b_all


def gru_cell_forward(x, h, fused):
    """x: (B, I), h: (B, H). fused = output of fuse_params (pre-laid-out)."""
    B, I = x.shape
    H = h.shape[1]
    w_all, u_rz, u_h, b_all = fused

    # Batch tile: multiple of 8 (sublane) up to 128; weights stay resident.
    BT = B if B <= 128 else 128
    if B % BT != 0:
        BT = B  # fall back to a single tile for awkward batch sizes
    grid = (B // BT,)

    kernel = functools.partial(gru_cell_kernel, hidden_size=H)

    return pl.pallas_call(
        kernel,
        out_shape=jax.ShapeDtypeStruct((B, H), h.dtype),
        grid=grid,
        in_specs=[
            pl.BlockSpec((BT, I), lambda i: (i, 0)),        # x        (tiled over B)
            pl.BlockSpec((BT, H), lambda i: (i, 0)),        # h        (tiled over B)
            pl.BlockSpec((I, 3 * H), lambda i: (0, 0)),     # W_all    (resident)
            pl.BlockSpec((H, 2 * H), lambda i: (0, 0)),     # U_rz     (resident)
            pl.BlockSpec((H, H), lambda i: (0, 0)),         # U_h      (resident)
            pl.BlockSpec((1, 3 * H), lambda i: (0, 0)),     # fused bias (resident)
        ],
        out_specs=pl.BlockSpec((BT, H), lambda i: (i, 0)),
        compiler_params=pltpu.CompilerParams(
            dimension_semantics=("parallel",)),
    )(x, h, w_all, u_rz, u_h, b_all)
    # TODO(synk): for large H (>=2048 f32), additionally tile H/N (256-aligned on
    # v6e/v7x) with a K-reduction axis + VMEM accumulator so resident U/W slabs
    # fit the 64 MiB (v7x) / 128 MiB (v5e/v6e) VMEM budget.


def init_params(key, input_size, hidden_size):
    """Deterministic uniform(-k, k) init, matching init_weights_uniform."""
    k = 1.0 / math.sqrt(hidden_size)
    names_shapes = [
        ("Wz_w", (hidden_size, input_size)), ("Wz_b", (hidden_size,)),
        ("Wr_w", (hidden_size, input_size)), ("Wr_b", (hidden_size,)),
        ("Wh_w", (hidden_size, input_size)), ("Wh_b", (hidden_size,)),
        ("Uz_w", (hidden_size, hidden_size)), ("Uz_b", (hidden_size,)),
        ("Ur_w", (hidden_size, hidden_size)), ("Ur_b", (hidden_size,)),
        ("Uh_w", (hidden_size, hidden_size)), ("Uh_b", (hidden_size,)),
    ]
    params = {}
    keys = jax.random.split(key, len(names_shapes))
    for (name, shape), kk in zip(names_shapes, keys):
        params[name] = jax.random.uniform(kk, shape, jnp.float32, -k, k)
    return params


def gru_cell_reference(x, h, params):
    """Pure-JAX reference identical to the PyTorch forward."""
    lin = lambda v, w, b: v @ w.T + b
    r = jax.nn.sigmoid(lin(x, params["Wr_w"], params["Wr_b"])
                       + lin(h, params["Ur_w"], params["Ur_b"]))
    z = jax.nn.sigmoid(lin(x, params["Wz_w"], params["Wz_b"])
                       + lin(h, params["Uz_w"], params["Uz_b"]))
    hc = jnp.tanh(lin(x, params["Wh_w"], params["Wh_b"])
                  + lin(r * h, params["Uh_w"], params["Uh_b"]))
    return (1.0 - z) * h + z * hc


if __name__ == "__main__":
    B, I, H = 8, 16, 32
    key = jax.random.PRNGKey(0)
    kx, kh, kp = jax.random.split(key, 3)

    x = jax.random.normal(kx, (B, I), jnp.float32)
    h = jax.random.normal(kh, (B, H), jnp.float32)
    params = init_params(kp, I, H)

    # One-time weight layout prep (hoisted out of the per-step path).
    fused = fuse_params(params, I, H)

    out = gru_cell_forward(x, h, fused)
    out = jax.block_until_ready(out)

    ref = gru_cell_reference(x, h, params)
    assert out.shape == (B, H)
    assert jnp.allclose(out, ref, atol=1e-5, rtol=1e-5)

    print("KERNEL_OK")
</pallas_src>

<mosaic_0001>
module attributes {stable_mosaic.version = 11 : i64} {
  func.func @gru_cell_kernel(%arg0: i32, %arg1: memref<8x16xf32, #tpu.memory_space<vmem>>, %arg2: memref<8x32xf32, #tpu.memory_space<vmem>>, %arg3: memref<16x96xf32, #tpu.memory_space<vmem>>, %arg4: memref<32x64xf32, #tpu.memory_space<vmem>>, %arg5: memref<32x32xf32, #tpu.memory_space<vmem>>, %arg6: memref<1x96xf32, #tpu.memory_space<vmem>>, %arg7: memref<8x32xf32, #tpu.memory_space<vmem>>) attributes {dimension_semantics = [#tpu.dimension_semantics<parallel>], iteration_bounds = array<i64: 1>, scalar_prefetch = 0 : i64, scratch_operands = 0 : i64, tpu.core_type = #tpu.core_type<tc>, window_params = [{transform_indices = @transform_0, window_bounds = array<i64: 8, 16>}, {transform_indices = @transform_1, window_bounds = array<i64: 8, 32>}, {pipeline_mode = #tpu.pipeline_mode<synchronous>, transform_indices = @transform_2, window_bounds = array<i64: 16, 96>}, {pipeline_mode = #tpu.pipeline_mode<synchronous>, transform_indices = @transform_3, window_bounds = array<i64: 32, 64>}, {pipeline_mode = #tpu.pipeline_mode<synchronous>, transform_indices = @transform_4, window_bounds = array<i64: 32, 32>}, {pipeline_mode = #tpu.pipeline_mode<synchronous>, transform_indices = @transform_5, window_bounds = array<i64: 1, 96>}, {transform_indices = @transform_6, window_bounds = array<i64: 8, 32>}]} {
    %c0 = arith.constant 0 : index
    %c0_0 = arith.constant 0 : index
    %0 = vector.load %arg1[%c0, %c0_0] : memref<8x16xf32, #tpu.memory_space<vmem>>, vector<8x16xf32>
    %c0_1 = arith.constant 0 : index
    %c0_2 = arith.constant 0 : index
    %1 = vector.load %arg2[%c0_1, %c0_2] : memref<8x32xf32, #tpu.memory_space<vmem>>, vector<8x32xf32>
    %c0_3 = arith.constant 0 : index
    %c0_4 = arith.constant 0 : index
    %2 = vector.load %arg3[%c0_3, %c0_4] : memref<16x96xf32, #tpu.memory_space<vmem>>, vector<16x96xf32>
    %cst = arith.constant dense<0.000000e+00> : vector<8x96xf32>
    %3 = tpu.matmul %0, %2, %cst {dimension_numbers = #tpu.dot_dimension_numbers<[1], [0], [0], [1], [0, 0, 1, 1], [], []>} : vector<8x16xf32>, vector<16x96xf32>, vector<8x96xf32> -> vector<8x96xf32>
    %c0_5 = arith.constant 0 : index
    %c0_6 = arith.constant 0 : index
    %4 = vector.load %arg6[%c0_5, %c0_6] : memref<1x96xf32, #tpu.memory_space<vmem>>, vector<1x96xf32>
    %5 = vector.broadcast %4 : vector<1x96xf32> to vector<8x96xf32>
    %6 = arith.addf %3, %5 : vector<8x96xf32>
    %c0_7 = arith.constant 0 : index
    %c0_8 = arith.constant 0 : index
    %7 = vector.load %arg4[%c0_7, %c0_8] : memref<32x64xf32, #tpu.memory_space<vmem>>, vector<32x64xf32>
    %cst_9 = arith.constant dense<0.000000e+00> : vector<8x64xf32>
    %8 = tpu.matmul %1, %7, %cst_9 {dimension_numbers = #tpu.dot_dimension_numbers<[1], [0], [0], [1], [0, 0, 1, 1], [], []>} : vector<8x32xf32>, vector<32x64xf32>, vector<8x64xf32> -> vector<8x64xf32>
    %9 = vector.extract_strided_slice %6 {offsets = [0, 0], sizes = [8, 32], strides = [1, 1]} : vector<8x96xf32> to vector<8x32xf32>
    %10 = vector.extract_strided_slice %8 {offsets = [0, 0], sizes = [8, 32], strides = [1, 1]} : vector<8x64xf32> to vector<8x32xf32>
    %11 = arith.addf %9, %10 : vector<8x32xf32>
    %12 = arith.negf %11 : vector<8x32xf32>
    %13 = math.exp %12 : vector<8x32xf32>
    %cst_10 = arith.constant 1.000000e+00 : f32
    %14 = vector.broadcast %cst_10 : f32 to vector<8x32xf32>
    %15 = arith.addf %14, %13 : vector<8x32xf32>
    %16 = arith.divf %14, %15 : vector<8x32xf32>
    %17 = vector.extract_strided_slice %6 {offsets = [0, 32], sizes = [8, 32], strides = [1, 1]} : vector<8x96xf32> to vector<8x32xf32>
    %18 = vector.extract_strided_slice %8 {offsets = [0, 32], sizes = [8, 32], strides = [1, 1]} : vector<8x64xf32> to vector<8x32xf32>
    %19 = arith.addf %17, %18 : vector<8x32xf32>
    %20 = arith.negf %19 : vector<8x32xf32>
    %21 = math.exp %20 : vector<8x32xf32>
    %cst_11 = arith.constant 1.000000e+00 : f32
    %22 = vector.broadcast %cst_11 : f32 to vector<8x32xf32>
    %23 = arith.addf %22, %21 : vector<8x32xf32>
    %24 = arith.divf %22, %23 : vector<8x32xf32>
    %25 = arith.mulf %16, %1 : vector<8x32xf32>
    %26 = vector.extract_strided_slice %6 {offsets = [0, 64], sizes = [8, 32], strides = [1, 1]} : vector<8x96xf32> to vector<8x32xf32>
    %c0_12 = arith.constant 0 : index
    %c0_13 = arith.constant 0 : index
    %27 = vector.load %arg5[%c0_12, %c0_13] : memref<32x32xf32, #tpu.memory_space<vmem>>, vector<32x32xf32>
    %cst_14 = arith.constant dense<0.000000e+00> : vector<8x32xf32>
    %28 = tpu.matmul %25, %27, %cst_14 {dimension_numbers = #tpu.dot_dimension_numbers<[1], [0], [0], [1], [0, 0, 1, 1], [], []>} : vector<8x32xf32>, vector<32x32xf32>, vector<8x32xf32> -> vector<8x32xf32>
    %29 = arith.addf %26, %28 : vector<8x32xf32>
    %30 = math.tanh %29 : vector<8x32xf32>
    %31 = arith.subf %30, %1 : vector<8x32xf32>
    %32 = arith.mulf %24, %31 : vector<8x32xf32>
    %33 = arith.addf %1, %32 : vector<8x32xf32>
    %c0_15 = arith.constant 0 : index
    %c0_16 = arith.constant 0 : index
    %34 = vector.load %arg7[%c0_15, %c0_16] : memref<8x32xf32, #tpu.memory_space<vmem>>, vector<8x32xf32>
    tpu.vector_store %arg7[%c0_15, %c0_16], %33 {strides = array<i32>} : memref<8x32xf32, #tpu.memory_space<vmem>>, vector<8x32xf32>,
    return
  }
  func.func @transform_0(%arg0: i32) -> (i32, i32) {
    %c0_i32 = arith.constant 0 : i32
    %c0_i32_0 = arith.constant 0 : i32
    return %arg0, %c0_i32 : i32, i32
  }
  func.func @transform_1(%arg0: i32) -> (i32, i32) {
    %c0_i32 = arith.constant 0 : i32
    %c0_i32_0 = arith.constant 0 : i32
    return %arg0, %c0_i32 : i32, i32
  }
  func.func @transform_2(%arg0: i32) -> (i32, i32) {
    %c0_i32 = arith.constant 0 : i32
    %c0_i32_0 = arith.constant 0 : i32
    %c0_i32_1 = arith.constant 0 : i32
    return %c0_i32, %c0_i32_0 : i32, i32
  }
  func.func @transform_3(%arg0: i32) -> (i32, i32) {
    %c0_i32 = arith.constant 0 : i32
    %c0_i32_0 = arith.constant 0 : i32
    %c0_i32_1 = arith.constant 0 : i32
    return %c0_i32, %c0_i32_0 : i32, i32
  }
  func.func @transform_4(%arg0: i32) -> (i32, i32) {
    %c0_i32 = arith.constant 0 : i32
    %c0_i32_0 = arith.constant 0 : i32
    %c0_i32_1 = arith.constant 0 : i32
    return %c0_i32, %c0_i32_0 : i32, i32
  }
  func.func @transform_5(%arg0: i32) -> (i32, i32) {
    %c0_i32 = arith.constant 0 : i32
    %c0_i32_0 = arith.constant 0 : i32
    %c0_i32_1 = arith.constant 0 : i32
    return %c0_i32, %c0_i32_0 : i32, i32
  }
  func.func @transform_6(%arg0: i32) -> (i32, i32) {
    %c0_i32 = arith.constant 0 : i32
    %c0_i32_0 = arith.constant 0 : i32
    return %arg0, %c0_i32 : i32, i32
  }
}

</mosaic_0001>

<bundles_post_ra>
// kernel: tpu_custom_call.1
= control target key start
LH: loop header
LB: loop body
LE: loop exit
PB: predicated region body
PF: predicated region fallthrough
CT: control target
= control target key end

     0   :  { %11 = vsyncpa [#allocation3], 0  ;;  %s733_s0 = inlined_call_operand.hbm [shape: f32[8,16], index: 0, kind: input, shape index: {}]   ;;  %s734_s1 = inlined_call_operand.hbm [shape: f32[8,32], index: 1, kind: input, shape index: {}]   ;;  %s735_s2 = inlined_call_operand.hbm [shape: f32[16,96], index: 2, kind: input, shape index: {}]   ;;  %s736_s3 = inlined_call_operand.hbm [shape: f32[32,64], index: 3, kind: input, shape index: {}]   ;;  %s737_s4 = inlined_call_operand.hbm [shape: f32[32,32], index: 4, kind: input, shape index: {}]   ;;  %s738_s5 = inlined_call_operand.vmem [shape: f32[1,96], index: 5, kind: input, shape index: {}]   ;;  %s739_s6 = inlined_call_operand.hbm [shape: f32[8,32], index: 6, kind: output, shape index: {}]  }
   0x1   :  { %12 = vsyncpa [#allocation6], 0 }
   0x2   :  { %13 = vsyncpa [#allocation9], 0 }
   0x3   :  { %14 = vsyncpa [#allocation4], 0  ;;  %s595_s21 = smov [#allocation5]   ;;  %s455_s25 = scalar_lea.hbm %s734_s1, 128 }
   0x4   :  { %s31_s22 = sshll.u32 %s595_s21, 4  ;;  %p456_p0 = scmp.ne.s32.totalorder %s734_s1, %s455_s25  ;;  %s32_s22 = int_to_ptr.vmem [resolvable:$true] %s31_s22 }
   0x5   :  { %p459_p1 = scmp.lt.u32.totalorder %s455_s25, %s734_s1 }
   0x7   :  { %p461_p2 = pnand %p459_p1, %p456_p0 }
   0x9   :  { %464 = shalt.err (!%p461_p2)
}
   0xa   :  { %s465_s30 = scalar_lea.vmem %s32_s22, 128  ;;  %p470_p4 = scmp.lt.s32.totalorder %s32_s22, %s32_s22 }
   0xb   :  { %p466_p3 = scmp.ne.s32.totalorder %s32_s22, %s465_s30  ;;  %p471_p5 = scmp.lt.s32.totalorder %s465_s30, %s465_s30 }
   0xd   :  { %p472_p6 = por %p471_p5, %p470_p4 }
   0xf   :  { %p473_p7 = pnand %p472_p6, %p466_p3 }
  0x11   :  { %476 = shalt.err (!%p473_p7)
}
  0x12   :  { %34 = dma.hbm_to_vmem [thread:$0]  %s734_s1, 128, %s32_s22, [#allocation6]  }
  0x13   :  { %s596_s9 = smov [#allocation8]   ;;  %s597_s11 = smov [#allocation2]  }
  0x14   :  { %s52_s10 = sshll.u32 %s596_s9, 4  ;;  %s21_s12 = sshll.u32 %s597_s11, 4  ;;  %s53_s10 = int_to_ptr.vmem [resolvable:$true] %s52_s10  ;;  %s22_s12 = int_to_ptr.vmem [resolvable:$true] %s21_s12 }
  0x15   :  { %s477_s15 = scalar_lea.hbm %s736_s3, 512 }
  0x16   :  { %p478_p8 = scmp.ne.s32.totalorder %s736_s3, %s477_s15  ;;  %p481_p9 = scmp.lt.u32.totalorder %s477_s15, %s736_s3 }
  0x18   :  { %p483_p10 = pnand %p481_p9, %p478_p8 }
  0x1a   :  { %486 = shalt.err (!%p483_p10)
}
  0x1b   :  { %s487_s1 = scalar_lea.vmem %s53_s10, 512  ;;  %p492_p12 = scmp.lt.s32.totalorder %s53_s10, %s53_s10 }
  0x1c   :  { %p488_p11 = scmp.ne.s32.totalorder %s53_s10, %s487_s1  ;;  %p493_p13 = scmp.lt.s32.totalorder %s487_s1, %s487_s1 }
  0x1e   :  { %p494_p0 = por %p493_p13, %p492_p12 }
  0x20   :  { %p495_p1 = pnand %p494_p0, %p488_p11 }
  0x22   :  { %498 = shalt.err (!%p495_p1)
}
  0x23   :  { %s598_s20 = smov 128   ;;  %s599_s21 = smov 8  }
  0x24   :  { %58 = dma.hbm_to_vmem [thread:$0]  %s736_s3, 512, %s53_s10, [#allocation9], %s598_s20, %s598_s20, %s599_s21  }
  0x25   :  { %s499_s26 = scalar_lea.hbm %s733_s0, 128 }
  0x26   :  { %p500_p2 = scmp.ne.s32.totalorder %s733_s0, %s499_s26  ;;  %p503_p3 = scmp.lt.u32.totalorder %s499_s26, %s733_s0 }
  0x28   :  { %p505_p4 = pnand %p503_p3, %p500_p2 }
  0x2a   :  { %508 = shalt.err (!%p505_p4)
}
  0x2b   :  { %s509_s7 = scalar_lea.vmem %s22_s12, 128  ;;  %p514_p6 = scmp.lt.s32.totalorder %s22_s12, %s22_s12 }
  0x2c   :  { %p510_p5 = scmp.ne.s32.totalorder %s22_s12, %s509_s7  ;;  %p515_p7 = scmp.lt.s32.totalorder %s509_s7, %s509_s7 }
  0x2e   :  { %p516_p8 = por %p515_p7, %p514_p6 }
  0x30   :  { %p517_p9 = pnand %p516_p8, %p510_p5 }
  0x32   :  { %520 = shalt.err (!%p517_p9)
}
  0x33   :  { %24 = dma.hbm_to_vmem [thread:$0]  %s733_s0, 128, %s22_s12, [#allocation3]  }
  0x34   :  { %s600_s9 = smov [#allocation7]   ;;  %s601_s11 = smov [#allocation10]  }
  0x35   :  { %s40_s10 = sshll.u32 %s600_s9, 4  ;;  %s64_s13 = sshll.u32 %s601_s11, 4  ;;  %s41_s10 = int_to_ptr.vmem [resolvable:$true] %s40_s10  ;;  %s65_s13 = int_to_ptr.vmem [resolvable:$true] %s64_s13 }
  0x36   :  { %s521_s16 = scalar_lea.hbm %s735_s2, 256 }
  0x37   :  { %p522_p10 = scmp.ne.s32.totalorder %s735_s2, %s521_s16  ;;  %p525_p11 = scmp.lt.u32.totalorder %s521_s16, %s735_s2 }
  0x39   :  { %p527_p12 = pnand %p525_p11, %p522_p10 }
  0x3b   :  { %530 = shalt.err (!%p527_p12)
}
  0x3c   :  { %s531_s0 = scalar_lea.vmem %s41_s10, 256  ;;  %p536_p0 = scmp.lt.s32.totalorder %s41_s10, %s41_s10 }
  0x3d   :  { %p532_p13 = scmp.ne.s32.totalorder %s41_s10, %s531_s0  ;;  %p537_p1 = scmp.lt.s32.totalorder %s531_s0, %s531_s0 }
  0x3f   :  { %p538_p2 = por %p537_p1, %p536_p0 }
  0x41   :  { %p539_p3 = pnand %p538_p2, %p532_p13 }
  0x43   :  { %542 = shalt.err (!%p539_p3)
}
  0x44   :  { %46 = dma.hbm_to_vmem [thread:$0]  %s735_s2, 256, %s41_s10, [#allocation6], %s598_s20, %s598_s20, %s599_s21  }
  0x45   :  { %s543_s25 = scalar_lea.hbm %s737_s4, 512 }
  0x46   :  { %p544_p4 = scmp.ne.s32.totalorder %s737_s4, %s543_s25  ;;  %p547_p5 = scmp.lt.u32.totalorder %s543_s25, %s737_s4 }
  0x48   :  { %p549_p6 = pnand %p547_p5, %p544_p4 }
  0x4a   :  { %552 = shalt.err (!%p549_p6)
}
  0x4b   :  { %s553_s30 = scalar_lea.vmem %s65_s13, 512  ;;  %p558_p8 = scmp.lt.s32.totalorder %s65_s13, %s65_s13 }
  0x4c   :  { %p554_p7 = scmp.ne.s32.totalorder %s65_s13, %s553_s30  ;;  %p559_p9 = scmp.lt.s32.totalorder %s553_s30, %s553_s30 }
  0x4e   :  { %p560_p10 = por %p559_p9, %p558_p8 }
  0x50   :  { %p561_p11 = pnand %p560_p10, %p554_p7 }
  0x52   :  { %564 = shalt.err (!%p561_p11)
}
  0x53   :  { %70 = dma.hbm_to_vmem [thread:$0]  %s737_s4, 512, %s65_s13, [#allocation9], %s598_s20, %s598_s20, %s599_s21  }
  0x54   :  { %587 = dma.done.wait [#allocation3], 128  }
  0x55   :  { %588 = vsyncadd [#allocation3], 4294967168 }
  0x56   :  { %589 = dma.done.wait [#allocation6], 384  }
  0x57   :  { %590 = vsyncadd [#allocation6], 4294966912 }
  0x58   :  { %591 = dma.done.wait [#allocation9], 1024  }
  0x59   :  { %592 = vsyncadd [#allocation9], 4294966272  ;;  %v602_v0 = vmov 0.0|0.0   ;;  %vm603_vm0 = vmmov 0   ;;  %v604_v1 = vmov 0.0   ;;  %v173_v2 = vld [vmem:[#allocation8] sm:$0xff] }
  0x5a   :  { %424 = vmatprep.subr.bf16.mxu1 %v602_v0  ;;  %421 = vmatprep.subr.bf16.mxu0 %v602_v0  ;;  %v174_v3 = vld [vmem:[#allocation8 + $0x8] sm:$0xff]  ;;  %v90_v4 = vld [vmem:[#allocation7] sm:$0xff]  ;;  %v91_v6 = vld [vmem:[#allocation7 + $0x8] sm:$0xff]  ;;  %vm99_vm1 = vcmask 130048   ;;  %vm177_vm2 = vcmask 261120   ;;  %s605_s21 = smov 64  }
  0x5b   :  { %396 = vmatprep.mubr.msk.f32.mxu0 %vm603_vm0, %v604_v1  ;;  %407 = vmatprep.mubr.msk.f32.mxu1 %vm603_vm0, %v604_v1  ;;  %v425_v5 = vpack.c.bf16 %v174_v3, %v173_v2  ;;  %v175_v7 = vld [vmem:[#allocation8 + $0x10] sm:$0xff]  ;;  %v422_v8 = vpack.c.bf16 %v91_v6, %v90_v4  ;;  %v176_v9 = vld [vmem:[#allocation8 + $0x18] sm:$0xff]  ;;  %v88_v11 = vld [vmem:[#allocation2] sm:$0xff]  ;;  %s607_s3 = smov [#allocation11]  }
  0x5c   :  { %v428_v10 = vpack.c.bf16 %v176_v9, %v175_v7  ;;  %v89_v12 = vld [vmem:[#allocation5] sm:$0xff]  ;;  %v259_v13 = vld [vmem:[#allocation10] sm:$0xff]  ;;  %v261_v15 = vld [vmem:[#allocation10 + $0x10] sm:$0xff]  ;;  %s363_s8 = sshll.u32 %s607_s3, 4  ;;  %s364_s8 = int_to_ptr.vmem [resolvable:$true] %s363_s8 }
  0x5d   :  { %426 = vmatpush3.bf16.msra.mxu1 %v425_v5  ;;  %423 = vmatpush3.bf16.msra.mxu0 %v422_v8  ;;  %v260_v14 = vld [vmem:[#allocation10 + $0x8] sm:$0xff]  ;;  %v262_v17 = vld [vmem:[#allocation10 + $0x18] sm:$0xff]  ;;  %v374_v19 = vld [vmem:[%s738_s5] ss:$0 sm:$0xff]  ;;  %s606_s5 = smov 96   ;;  %s565_s9 = scalar_lea.vmem %s364_s8, 128 }
  0x5e   :  { %427 = vmatprep.subr.bf16.mxu1 %v602_v0  ;;  %430 = vmatprep.subr.bf16.mxu0 %v602_v0  ;;  %v431_v16 = vpack.c.bf16 %v260_v14, %v259_v13  ;;  %v434_v18 = vpack.c.bf16 %v262_v17, %v261_v15  ;;  %p566_p12 = scmp.ne.s32.totalorder %s364_s8, %s565_s9  ;;  %p570_p13 = scmp.lt.s32.totalorder %s364_s8, %s364_s8 }
  0x5f   :  { %p571_p0 = scmp.lt.s32.totalorder %s565_s9, %s565_s9 }
  0x60   :  { %397 = vmatmul.mubr.msk.f32.vlgmr.msra.gmra.mrb[0].mxu0 %vm99_vm1, %v88_v11 }
  0x61   :  { %429 = vmatpush3.bf16.msra.mxu1 %v428_v10  ;;  %418 = vmatprep.mubr.msk.f32.mxu0 %vm603_vm0, %v604_v1  ;;  %p572_p1 = por %p571_p0, %p570_p13 }
  0x62   :  { %432 = vmatpush3.bf16.msra.mxu0 %v431_v16 }
  0x63   :  { %433 = vmatprep.subr.bf16.mxu0 %v602_v0  ;;  %p573_p2 = pnand %p572_p1, %p566_p12 }
  0x64   :  { %408 = vmatmul.mubr.msk.f32.vlgmr.msra.gmra.mrb[0].mxu1 %vm177_vm2, %v89_v12 }
  0x66   :  { %435 = vmatpush3.bf16.msra.mxu0 %v434_v18 }
 0x133   :  { %v169_v20 = vpop.f32.mrb[0].mxu0 }
 0x134   :  { %v170_v21 = vadd.f32 %v374_v19, %v169_v20  ;;  %v398_v22 = vpop.f32.mrb[1].mxu0 }
 0x137   :  { %v247_v23 = vpop.f32.mrb[0].mxu1 }
 0x138   :  { %v251_v24 = vadd.f32 %v247_v23, %v170_v21  ;;  %v409_v25 = vpop.f32.mrb[1].mxu1 }
 0x13a   :  { %v377_v26 = vmul.f32 -1.442695, %v251_v24 }
 0x13c   :  { %449 = vpow2.f32 %v377_v26 }
 0x146   :  { %v450_v27 = vpop.eup %449 }
 0x147   :  { %v255_v28 = vadd.f32 1.0, %v450_v27 }
 0x149   :  { %451 = vrcp.f32 %v255_v28 }
 0x153   :  { %v452_v29 = vpop.eup %451 }
 0x154   :  { %v258_v30 = vmul.f32 %v452_v29, %v89_v12 }
 0x156   :  { %419 = vmatmul.mubr.msk.f32.vlgmr.msra.gmra.mrb[2].mxu0 %vm177_vm2, %v258_v30 }
 0x229   :  { %v332_v31 = vpop.f32.mrb[2].mxu0 }
 0x22a   :  { %337 = vrot.lane.b32.xlu0 %v332_v31, %s605_s21  ;;  %v420_v32 = vpop.f32.mrb[3].mxu0 }
 0x22e   :  { %342 = vrot.lane.b32.xlu0 %v89_v12, %s605_s21 }
 0x29c   :  { %v338_v33 = vpop.permute.xlu0 %337 }
 0x29d   :  { %v340_v34 = vadd.f32 %v338_v33, %v170_v21 }
 0x29f   :  { %453 = vtanh.f32 %v340_v34 }
 0x2a0   :  { %v343_v35 = vpop.permute.xlu0 %342 }
 0x2a9   :  { %v454_v36 = vpop.eup %453 }
 0x2aa   :  { %v345_v37 = vsub.f32 %v454_v36, %v343_v35 }
 0x2ac   :  { %347 = vrot.lane.b32.xlu1 %v345_v37, %s606_s5 }
 0x31e   :  { %v348_v38 = vpop.permute.xlu1 %347 }
 0x31f   :  { %v350_v39 = vmul.f32 %v452_v29, %v348_v38 }
 0x321   :  { %352 = vrot.lane.b32.xlu1 %v350_v39, %s606_s5 }
 0x393   :  { %v353_v40 = vpop.permute.xlu1 %352 }
 0x394   :  { %v355_v41 = vadd.f32 %v353_v40, %v89_v12 }
 0x396   :  { %356 = vst.msk [vmem:[#allocation11] sm:$0xff] %vm177_vm2, %v355_v41 }
 0x397   :  { %576 = shalt.err (!%p573_p2)
}
 0x398   :  { %s577_s13 = scalar_lea.hbm %s739_s6, 128 }
 0x399   :  { %p578_p3 = scmp.ne.s32.totalorder %s739_s6, %s577_s13  ;;  %p581_p4 = scmp.lt.u32.totalorder %s577_s13, %s739_s6 }
 0x39b   :  { %p583_p5 = pnand %p581_p4, %p578_p3 }
 0x39d   :  { %586 = shalt.err (!%p583_p5)
}
 0x39e   :  { %366 = dma.vmem_to_hbm [thread:$0]  %s364_s8, 128, %s739_s6, [#allocation4]  }
 0x39f   :  { %593 = dma.done.wait [#allocation4], 128  }
 0x3a0   :  { %594 = vsyncadd [#allocation4], 4294967168 }
 0x3a1   :  { %370 = vsyncpa [#allocation3], 1 }
 0x3a2   :  { %371 = vsyncpa [#allocation6], 1 }
 0x3a3   :  { %372 = vsyncpa [#allocation9], 1 }
 0x3a4   :  { %373 = vsyncpa [#allocation4], 1 }

</bundles_post_ra>
